<compile_context>
chip_gen: v7x
topology: tpu7x:2x2x1
jax: 0.10.0
libtpu: 0.0.40
codegen_flags: <defaults>
</compile_context>

<pallas_src>
import jax
import jax.numpy as jnp
from jax.experimental import pallas as pl
from jax.experimental.pallas import tpu as pltpu


def _pa_kernel(x_ref, w1_ref, b1_ref, w2_ref, b2_ref, o_ref):
    # x_ref: (C, T) block -- channels on sublanes, pixels (H*W) on lanes.
    x = x_ref[...]
    xf = x.astype(jnp.float32)

    # conv1 (1x1): (hidden, C) @ (C, T) + b1 -> (hidden, T) on the MXU.
    h = jnp.dot(w1_ref[...], xf, preferred_element_type=jnp.float32) + b1_ref[...]
    # LeakyReLU(0.2)
    h = jnp.where(h >= 0, h, 0.2 * h)

    # conv2 (1x1): single output channel, tiny (C//8) contraction ->
    # VPU multiply + small sublane reduction instead of a degenerate matmul.
    y = jnp.sum(h * w2_ref[...], axis=0, keepdims=True) + b2_ref[...]  # (1, T)
    y = jax.nn.sigmoid(y)

    # pixel attention: y broadcasts over the channel (sublane) axis.
    o_ref[...] = (x * y.astype(x.dtype)).astype(o_ref.dtype)


def _choose_tile_hw(hw, c, itemsize, target_block_bytes=4 << 20, max_tile=32768):
    """Largest lane-dense tile along H*W that evenly divides hw and keeps a
    single (C, tile) block around `target_block_bytes`."""
    cap = target_block_bytes // max(1, c * itemsize)
    cap = max(128, min(max_tile, cap))
    cap = (cap // 128) * 128
    if hw <= cap:
        return hw
    t = cap
    while t >= 128:
        if hw % t == 0:
            return t
        t -= 128
    return hw  # fallback: single big tile (full H*W)


def pa_layer(x_nchw, w1, b1, w2, b2, *, tile_hw=None):
    """PALayer forward.

    x_nchw: (N, C, H, W)
    w1: (C//8, C)   b1: (C//8,)   -- first 1x1 conv (out_ch x in_ch)
    w2: (C//8,)     b2: ()        -- second 1x1 conv (single output channel)
    returns: (N, C, H, W), same dtype as x.
    """
    N, C, H, W = x_nchw.shape
    hidden = w1.shape[0]
    HW = H * W

    itemsize = jnp.dtype(x_nchw.dtype).itemsize
    if tile_hw is None:
        tile_hw = _choose_tile_hw(HW, C, itemsize)
    assert HW % tile_hw == 0, "tile_hw must divide H*W"

    # Free reshape -- no transposes, no extra HBM traffic.
    x_flat = x_nchw.reshape(N, C, HW)

    w1f = w1.astype(jnp.float32)                      # (hidden, C)
    b1c = b1.reshape(hidden, 1).astype(jnp.float32)   # broadcast over lanes
    w2c = w2.reshape(hidden, 1).astype(jnp.float32)
    b2c = jnp.asarray(b2, jnp.float32).reshape(1, 1)

    grid = (N, HW // tile_hw)

    # VMEM budget: in + out blocks, double-buffered, plus f32 temps/weights.
    block_bytes = C * tile_hw * itemsize
    f32_temps = (C + hidden + 2) * tile_hw * 4
    vmem_bytes = int(block_bytes * 2 * 2) + int(f32_temps) + (2 << 20)
    vmem_bytes = max(vmem_bytes, 32 * 1024 * 1024)
    vmem_bytes = min(vmem_bytes, 48 * 1024 * 1024)    # stays inside v7x's 64 MiB

    out_flat = pl.pallas_call(
        _pa_kernel,
        out_shape=jax.ShapeDtypeStruct((N, C, HW), x_nchw.dtype),
        grid_spec=pltpu.PrefetchScalarGridSpec(
            num_scalar_prefetch=0,
            grid=grid,
            in_specs=[
                pl.BlockSpec((None, C, tile_hw), lambda n, t: (n, 0, t)),  # x
                pl.BlockSpec((hidden, C), lambda n, t: (0, 0)),            # w1
                pl.BlockSpec((hidden, 1), lambda n, t: (0, 0)),            # b1
                pl.BlockSpec((hidden, 1), lambda n, t: (0, 0)),            # w2
                pl.BlockSpec((1, 1), lambda n, t: (0, 0)),                 # b2
            ],
            out_specs=pl.BlockSpec((None, C, tile_hw), lambda n, t: (n, 0, t)),
        ),
        compiler_params=pltpu.CompilerParams(
            dimension_semantics=("parallel", "parallel"),
            vmem_limit_bytes=vmem_bytes,
        ),
    )(x_flat, w1f, b1c, w2c, b2c)

    return out_flat.reshape(N, C, H, W)


def _reference(x, w1, b1, w2, b2):
    # pure-JAX reference of the PyTorch forward
    xf = x.astype(jnp.float32)
    w1f = w1.astype(jnp.float32)
    w2f = w2.astype(jnp.float32)
    h = jnp.einsum("nchw,kc->nkhw", xf, w1f) + b1.astype(jnp.float32)[None, :, None, None]
    h = jnp.where(h >= 0, h, 0.2 * h)
    y = jnp.einsum("nkhw,k->nhw", h, w2f) + jnp.asarray(b2, jnp.float32)
    y = jax.nn.sigmoid(y)[:, None, :, :]
    return (xf * y).astype(x.dtype)


if __name__ == "__main__":
    key = jax.random.PRNGKey(0)
    k_x, k_w1, k_b1, k_w2, k_b2 = jax.random.split(key, 5)

    # small shapes consistent with the module (channel divisible by 8)
    N, C, H, W = 2, 16, 16, 16
    hidden = C // 8  # 2

    x = jax.random.normal(k_x, (N, C, H, W), dtype=jnp.float32)

    # deterministic synthetic Conv2d-1x1 parameters
    w1 = jax.random.normal(k_w1, (hidden, C), dtype=jnp.float32) * (1.0 / (C ** 0.5))
    b1 = jax.random.normal(k_b1, (hidden,), dtype=jnp.float32) * 0.1
    w2 = jax.random.normal(k_w2, (hidden,), dtype=jnp.float32) * (1.0 / (hidden ** 0.5))
    b2 = jax.random.normal(k_b2, (), dtype=jnp.float32) * 0.1

    out = jax.block_until_ready(pa_layer(x, w1, b1, w2, b2))

    ref = _reference(x, w1, b1, w2, b2)
    assert out.shape == x.shape and out.dtype == x.dtype
    assert jnp.allclose(out, ref, atol=1e-5, rtol=1e-5)

    print("KERNEL_OK")
</pallas_src>

<mosaic_0001>
module attributes {stable_mosaic.version = 11 : i64} {
  func.func @_pa_kernel(%arg0: i32, %arg1: i32, %arg2: memref<1x16x256xf32, #tpu.memory_space<vmem>>, %arg3: memref<2x16xf32, #tpu.memory_space<vmem>>, %arg4: memref<2x1xf32, #tpu.memory_space<vmem>>, %arg5: memref<2x1xf32, #tpu.memory_space<vmem>>, %arg6: memref<1x1xf32, #tpu.memory_space<vmem>>, %arg7: memref<1x16x256xf32, #tpu.memory_space<vmem>>) attributes {dimension_semantics = [#tpu.dimension_semantics<parallel>, #tpu.dimension_semantics<parallel>], iteration_bounds = array<i64: 2, 1>, scalar_prefetch = 0 : i64, scratch_operands = 0 : i64, tpu.core_type = #tpu.core_type<tc>, window_params = [{transform_indices = @transform_0, window_bounds = array<i64: 1, 16, 256>}, {pipeline_mode = #tpu.pipeline_mode<synchronous>, transform_indices = @transform_1, window_bounds = array<i64: 2, 16>}, {pipeline_mode = #tpu.pipeline_mode<synchronous>, transform_indices = @transform_2, window_bounds = array<i64: 2, 1>}, {pipeline_mode = #tpu.pipeline_mode<synchronous>, transform_indices = @transform_3, window_bounds = array<i64: 2, 1>}, {pipeline_mode = #tpu.pipeline_mode<synchronous>, transform_indices = @transform_4, window_bounds = array<i64: 1, 1>}, {transform_indices = @transform_5, window_bounds = array<i64: 1, 16, 256>}]} {
    %c0 = arith.constant 0 : index
    %c0_0 = arith.constant 0 : index
    %c0_1 = arith.constant 0 : index
    %0 = vector.load %arg2[%c0, %c0_0, %c0_1] : memref<1x16x256xf32, #tpu.memory_space<vmem>>, vector<1x16x256xf32>
    %1 = vector.shape_cast %0 : vector<1x16x256xf32> to vector<16x256xf32>
    %c0_2 = arith.constant 0 : index
    %c0_3 = arith.constant 0 : index
    %2 = vector.load %arg3[%c0_2, %c0_3] : memref<2x16xf32, #tpu.memory_space<vmem>>, vector<2x16xf32>
    %cst = arith.constant dense<0.000000e+00> : vector<2x256xf32>
    %3 = tpu.matmul %2, %1, %cst {dimension_numbers = #tpu.dot_dimension_numbers<[1], [0], [0], [1], [0, 0, 1, 1], [], []>} : vector<2x16xf32>, vector<16x256xf32>, vector<2x256xf32> -> vector<2x256xf32>
    %c0_4 = arith.constant 0 : index
    %c0_5 = arith.constant 0 : index
    %4 = vector.load %arg4[%c0_4, %c0_5] : memref<2x1xf32, #tpu.memory_space<vmem>>, vector<2x1xf32>
    %5 = vector.broadcast %4 : vector<2x1xf32> to vector<2x256xf32>
    %6 = arith.addf %3, %5 : vector<2x256xf32>
    %cst_6 = arith.constant 0.000000e+00 : f32
    %7 = vector.broadcast %cst_6 : f32 to vector<2x256xf32>
    %8 = arith.cmpf oge, %6, %7 : vector<2x256xf32>
    %cst_7 = arith.constant 2.000000e-01 : f32
    %9 = vector.broadcast %cst_7 : f32 to vector<2x256xf32>
    %10 = arith.mulf %9, %6 : vector<2x256xf32>
    %11 = arith.select %8, %6, %10 : vector<2x256xi1>, vector<2x256xf32>
    %c0_8 = arith.constant 0 : index
    %c0_9 = arith.constant 0 : index
    %12 = vector.load %arg5[%c0_8, %c0_9] : memref<2x1xf32, #tpu.memory_space<vmem>>, vector<2x1xf32>
    %13 = vector.broadcast %12 : vector<2x1xf32> to vector<2x256xf32>
    %14 = arith.mulf %11, %13 : vector<2x256xf32>
    %cst_10 = arith.constant dense<0.000000e+00> : vector<256xf32>
    %15 = vector.multi_reduction <add>, %14, %cst_10 [0] : vector<2x256xf32> to vector<256xf32>
    %16 = vector.shape_cast %15 : vector<256xf32> to vector<1x256xf32>
    %c0_11 = arith.constant 0 : index
    %c0_12 = arith.constant 0 : index
    %17 = vector.load %arg6[%c0_11, %c0_12] : memref<1x1xf32, #tpu.memory_space<vmem>>, vector<1x1xf32>
    %18 = vector.broadcast %17 : vector<1x1xf32> to vector<1x256xf32>
    %19 = arith.addf %16, %18 : vector<1x256xf32>
    %20 = arith.negf %19 : vector<1x256xf32>
    %21 = math.exp %20 : vector<1x256xf32>
    %cst_13 = arith.constant 1.000000e+00 : f32
    %22 = vector.broadcast %cst_13 : f32 to vector<1x256xf32>
    %23 = arith.addf %22, %21 : vector<1x256xf32>
    %24 = arith.divf %22, %23 : vector<1x256xf32>
    %25 = vector.broadcast %24 : vector<1x256xf32> to vector<16x256xf32>
    %26 = arith.mulf %1, %25 : vector<16x256xf32>
    %c0_14 = arith.constant 0 : index
    %c0_15 = arith.constant 0 : index
    %c0_16 = arith.constant 0 : index
    %27 = vector.load %arg7[%c0_14, %c0_15, %c0_16] : memref<1x16x256xf32, #tpu.memory_space<vmem>>, vector<1x16x256xf32>
    %28 = vector.shape_cast %27 : vector<1x16x256xf32> to vector<16x256xf32>
    %29 = vector.shape_cast %26 : vector<16x256xf32> to vector<1x16x256xf32>
    tpu.vector_store %arg7[%c0_14, %c0_15, %c0_16], %29 {strides = array<i32>} : memref<1x16x256xf32, #tpu.memory_space<vmem>>, vector<1x16x256xf32>,
    return
  }
  func.func @transform_0(%arg0: i32, %arg1: i32) -> (i32, i32, i32) {
    %c0_i32 = arith.constant 0 : i32
    %c0_i32_0 = arith.constant 0 : i32
    return %arg0, %c0_i32, %arg1 : i32, i32, i32
  }
  func.func @transform_1(%arg0: i32, %arg1: i32) -> (i32, i32) {
    %c0_i32 = arith.constant 0 : i32
    %c0_i32_0 = arith.constant 0 : i32
    %c0_i32_1 = arith.constant 0 : i32
    return %c0_i32, %c0_i32_0 : i32, i32
  }
  func.func @transform_2(%arg0: i32, %arg1: i32) -> (i32, i32) {
    %c0_i32 = arith.constant 0 : i32
    %c0_i32_0 = arith.constant 0 : i32
    %c0_i32_1 = arith.constant 0 : i32
    return %c0_i32, %c0_i32_0 : i32, i32
  }
  func.func @transform_3(%arg0: i32, %arg1: i32) -> (i32, i32) {
    %c0_i32 = arith.constant 0 : i32
    %c0_i32_0 = arith.constant 0 : i32
    %c0_i32_1 = arith.constant 0 : i32
    return %c0_i32, %c0_i32_0 : i32, i32
  }
  func.func @transform_4(%arg0: i32, %arg1: i32) -> (i32, i32) {
    %c0_i32 = arith.constant 0 : i32
    %c0_i32_0 = arith.constant 0 : i32
    %c0_i32_1 = arith.constant 0 : i32
    return %c0_i32, %c0_i32_0 : i32, i32
  }
  func.func @transform_5(%arg0: i32, %arg1: i32) -> (i32, i32, i32) {
    %c0_i32 = arith.constant 0 : i32
    %c0_i32_0 = arith.constant 0 : i32
    return %arg0, %c0_i32, %arg1 : i32, i32, i32
  }
}

</mosaic_0001>

<bundles_post_ra>
// kernel: tpu_custom_call.1
= control target key start
LH: loop header
LB: loop body
LE: loop exit
PB: predicated region body
PF: predicated region fallthrough
CT: control target
= control target key end

     0   :  { %s976_s0 = inlined_call_operand.hbm [shape: f32[2,16,256], index: 0, kind: input, shape index: {}]   ;;  %s977_s1 = inlined_call_operand.vmem [shape: f32[2,16], index: 1, kind: input, shape index: {}]   ;;  %s978_s2 = inlined_call_operand.vmem [shape: f32[2,1], index: 2, kind: input, shape index: {}]   ;;  %s979_s3 = inlined_call_operand.vmem [shape: f32[2,1], index: 3, kind: input, shape index: {}]   ;;  %s980_s4 = inlined_call_operand.<no memory space> [shape: f32[1,1], index: 4, kind: input, shape index: {}]   ;;  %s981_s5 = inlined_call_operand.hbm [shape: f32[2,16,256], index: 5, kind: output, shape index: {}]  }
   0x1   :  { %v10_v0 = vstv %s980_s4 }
   0x2   :  { %11 = vst [vmem:[#allocation2] sm:$0x1] %v10_v0 }
   0x3   :  { %12 = vsyncpa [#allocation4], 0 }
   0x4   :  { %14 = vsyncpa [#allocation4 + $0x1], 0 }
   0x5   :  { %15 = vsyncpa [#allocation5], 0 }
   0x6   :  { %17 = vsyncpa [#allocation5 + $0x1], 0  ;;  %s772_s20 = smov 0   ;;  %s774_s21 = smov 0  }
   0x7   :  { %s776_s22 = smov 0   ;;  %s778_s23 = smov 0  }
   0x8   :  { %s780_s24 = smov 0   ;;  %s782_s25 = smov 0  }
   0x9 LB: > { %s515_s4 = sadd.s32 4294967295, %s729_s25   ;;  %s516_s26 = sadd.s32 4294967294, %s729_s25   ;;  %s729_s25 = sphi %s782_s25, %s23_s25   ;;  %s725_s24 = sphi %s780_s24, %s996_s24   ;;  %s721_s23 = sphi %s778_s23, %s995_s23   ;;  %s717_s22 = sphi %s776_s22, %s994_s22   ;;  %s713_s21 = sphi %s774_s21, %s993_s21   ;;  %s709_s20 = sphi %s772_s20, %s992_s20  }
   0xa   : > { %s35_s27 = sadd.s32 1, %s725_s24  ;;  %s44_s28 = sadd.s32 1, %s717_s22 }
   0xb   : > { %p37_p0 = scmp.ge.s32.totalorder %s35_s27, 2  ;;  %p51_p1 = scmp.ne.s32.totalorder %s717_s22, %s713_s21 }
   0xc   : > { %p52_p2 = scmp.eq.s32.totalorder %s729_s25, 0  ;;  %p57_p3 = scmp.ne.s32.totalorder %s713_s21, %s709_s20 }
   0xd   : > { %s998_s27 = smov (%p37_p0, %s35_s27), 0  ;;  %p58_p5 = scmp.eq.s32.totalorder %s515_s4, 0 }
   0xe   : > { %p813_p4 = por %p52_p2, %p51_p1  ;;  %s39_s30 = ssub.s32 %s725_s24, %s998_s27 }
   0xf   : > { %p167_p6 = scmp.eq.s32.totalorder %s515_s4, 1  ;;  %p42_p7 = scmp.eq.s32.totalorder %s39_s30, 0 }
  0x10   : > { %p819_p8 = por %p58_p5, %p57_p3  ;;  %p173_p10 = scmp.eq.s32.totalorder %s516_s26, 1 }
  0x11   : > { %p823_p9 = por %p167_p6, %p51_p1  ;;  %p551_p13 = scmp.lt.s32.totalorder %s729_s25, 2 }
  0x12   : > { %s828_s8 = scalar_select %p42_p7, %s717_s22, %s44_s28  }
  0x13   : > { %s985_s7 = scalar_select %p823_p9, 1, 0 }
  0x14   : > { %p830_p11 = por %p173_p10, %p57_p3  ;;  %s205_s10 = sand.u32 1, %s717_s22  }
  0x15   : > { %s519_s11 = sshll.u32 %s205_s10, 5  ;;  %s533_s12 = sshll.u32 %s725_s24, 9 }
  0x16   : > { %s986_s9 = scalar_select %p830_p11, 1, 0 }
  0x17   : > { %s841_s15 = scalar_lea.hbm %s976_s0, %s533_s12  ;;  %s209_s16 = scalar_lea.vmem [#allocation3], %s519_s11 }
  0x18   : > { %s218_s17 = sshll.u32 %s209_s16, 4  ;;  %p847_p0 = pnand %p551_p13, %p813_p4  ;;  %s843_s17 = int_to_ptr.vmem [resolvable:$true] %s218_s17 }
  0x19   : > { %s852_s19 = scalar_lea.sflag [#allocation4], %s205_s10  ;;  %s617_s4 = scalar_lea.hbm %s841_s15, 512 }
  0x1a   : > { %p618_p2 = scmp.ne.s32.totalorder %s841_s15, %s617_s4  ;;  %p619_p3 = pneg %p847_p0 }
  0x1b   : > { %s622_s29 = scalar_lea.hbm %s976_s0, 1024  ;;  %p623_p4 = scmp.lt.u32.totalorder %s841_s15, %s976_s0 }
  0x1c   : > { %p620_p5 = pnand %p619_p3, %p618_p2  ;;  %p624_p7 = scmp.lt.u32.totalorder %s622_s29, %s617_s4 }
  0x1d   : > { %p626_p13 = scmp.lt.u32.totalorder %s617_s4, %s841_s15 }
  0x1e   : > { %p621_p6 = pneg %p620_p5  ;;  %p625_p10 = por %p624_p7, %p623_p4 }
  0x20   : > { %p627_p12 = por %p626_p13, %p625_p10 }
  0x22   : > { %p628_p1 = pnand %p627_p12, %p621_p6 }
  0x24   : > { %631 = shalt.err (!%p628_p1)
}
  0x25   : > { %s632_s10 = scalar_lea.vmem %s843_s17, 512  ;;  %s731_s12 = smov [#allocation3]  }
  0x26   : > { %p633_p2 = scmp.ne.s32.totalorder %s843_s17, %s632_s10  ;;  %s637_s13 = sshll.u32 %s731_s12, 4  ;;  %s638_s13 = int_to_ptr.vmem [resolvable:$false] %s637_s13 }
  0x27   : > { %s639_s14 = scalar_lea.vmem %s638_s13, 1024  ;;  %p640_p9 = scmp.lt.s32.totalorder %s843_s17, %s638_s13 }
  0x28   : > { %p635_p5 = pnand %p633_p2, %p619_p3  ;;  %p641_p4 = scmp.lt.s32.totalorder %s639_s14, %s632_s10 }
  0x2a   : > { %p636_p11 = pneg %p635_p5  ;;  %p642_p7 = por %p641_p4, %p640_p9 }
  0x2c   : > { %p643_p10 = pnand %p642_p7, %p636_p11 }
  0x2e   : > { %646 = shalt.err (!%p643_p10)
}
  0x2f   : > { %s732_s16 = smov 256   ;;  %s733_s4 = smov 16  }
  0x30   : > { %546 = dma.hbm_to_vmem [thread:$0]  (!%p847_p0), %s841_s15, 512, %s843_s17, %s852_s19, %s732_s16, %s732_s16, %s733_s4  }
  0x31   : > { %p226_p12 = scmp.lt.s32.totalorder %s729_s25, 3  ;;  %p988_p1 = scmp.ge.s32.totalorder %s729_s25, 1 }
  0x33   : > { %p227_p3 = pnand %p988_p1, %p226_p12 }
  0x34   : > { %s884_s26 = sand.u32 (!%p227_p3), 1, %s713_s21  }
  0x35   : > { %230 = sbr.rel (%p227_p3) target bundleno = 346 (0x15a), region = 40  ;;  %s523_s28 = sshll.u32 (!%p227_p3), %s884_s26, 5 }
  0x36   : > { %s233_s29 = scalar_lea.sflag (!%p227_p3), [#allocation4], %s884_s26  ;;  %s236_s30 = scalar_lea.vmem (!%p227_p3), [#allocation3], %s523_s28 }
  0x3c   : > { %700 = dma.done.wait (%p819_p8), %s233_s29, 512  }
  0x3d   : > { %702 = vsyncadd (%p819_p8), %s233_s29, 4294966784  ;;  %v734_v1 = vmov 0.0   ;;  %v735_v2 = vmov 0   ;;  %v894_v3 = vld [vmem:[%s236_s30 + $0x8] sm:$0xff]  ;;  %v896_v4 = vld [vmem:[%s236_s30 + $0x18] sm:$0xff]  ;;  %vm276_vm0 = vcmask 130048   ;;  %v386_v22 = vlaneseq }
  0x3e   : > { %344 = vmatprep.mubr.f32.mxu0 %v734_v1  ;;  %607 = vset.pattern.permute.xlu0 %v735_v2  ;;  %v898_v5 = vld [vmem:[%s236_s30] sm:$0xff]  ;;  %v535_v6 = vpack.c.bf16 %v896_v4, %v894_v3  ;;  %v902_v7 = vld [vmem:[%s236_s30 + $0x10] sm:$0xff]  ;;  %v380_v10 = vld [vmem:[#allocation2] sm:$0x1]  ;;  %vm365_vm3 = vcmask 1041408   ;;  %s534_s10 = sshll.u32 %s721_s23, 9 }
  0x3f   : > { %608 = vset.pattern.permute.xlu1 %v735_v2  ;;  %v270_v8 = vld [vmem:[%s978_s2] sm:$0x3]  ;;  %v537_v9 = vpack.c.bf16 %v902_v7, %v898_v5  ;;  %v387_v29 = vshrl.u32 %v386_v22, 7  ;;  %s262_s12 = scalar_lea.vmem [#allocation6], %s523_s28  ;;  %s923_s4 = scalar_lea.hbm %s981_s5, %s534_s10 }
  0x40   : > { %273 = vperm.xlu0 %607, %v270_v8   ;;  %536 = vmatprep.subr.bf16.mxu0 %v535_v6  ;;  %v357_v11 = vld [vmem:[%s979_s3] sm:$0x3]  ;;  %s428_s13 = sshll.u32 %s262_s12, 4  ;;  %s413_s23 = scalar_lea.sflag [#allocation5], %s884_s26  ;;  %s925_s13 = int_to_ptr.vmem [resolvable:$true] %s428_s13 }
  0x41   : > { %383 = vperm.xlu1 %608, %v380_v10   ;;  %538 = vmatpush1.bf16.msra.mxu0 %v537_v9  ;;  %v269_v12 = vld [vmem:[%s977_s1] sm:$0x3]  ;;  %v388_v34 = vsub.s32 0, %v387_v29  ;;  %s647_s28 = scalar_lea.vmem %s925_s13, 512  ;;  %p989_p9 = scmp.ne.s32.totalorder %s985_s7, 0 }
  0x42   : > { %p648_p8 = scmp.ne.s32.totalorder %s925_s13, %s647_s28  ;;  %s736_s29 = smov [#allocation6]  }
  0x43   : > { %s651_s30 = sshll.u32 %s736_s29, 4  ;;  %s652_s30 = int_to_ptr.vmem [resolvable:$false] %s651_s30 }
  0x44   : > { %360 = vperm.xlu0 %607, %v357_v11   ;;  %525 = vmatmul.mubr.msk.f32.vlgmr.msra.gmra.mrb[0].mxu0 %vm276_vm0, %v269_v12  ;;  %p649_p11 = pnand %p648_p8, %p989_p9  ;;  %s653_s15 = scalar_lea.vmem %s652_s30, 1024 }
  0x45   : > { %p654_p6 = scmp.lt.s32.totalorder %s925_s13, %s652_s30  ;;  %p655_p13 = scmp.lt.s32.totalorder %s653_s15, %s647_s28 }
  0x46   : > { %p650_p0 = pneg %p649_p11 }
  0x47   : > { %p656_p2 = por %p655_p13, %p654_p6 }
  0x49   : > { %p657_p5 = pnand %p656_p2, %p650_p0 }
  0xbf   : > { %v274_v13 = vpop.permute.xlu0 %273 }
  0xc0   : > { %v384_v35 = vpop.permute.xlu1 %383 }
  0xc1   : > { %v389_v40 = vrot.slane %v384_v35, %v388_v34 }
  0xc3   : > { %v361_v20 = vpop.permute.xlu0 %360 }
 0x117   : > { %v346_v14 = vpop.f32.mrb[0].mxu0 }
 0x118   : > { %v347_v15 = vadd.f32 %v346_v14, %v274_v13  ;;  %v348_v16 = vpop.f32.mrb[1].mxu0 }
 0x119   : > { %v349_v17 = vadd.f32 %v348_v16, %v274_v13 }
 0x11a   : > { %v353_v18 = vmul.f32 0.2, %v347_v15  ;;  %vm351_vm1 = vcmp.ge.f32.partialorder %v347_v15, 0.0 }
 0x11b   : > { %vm352_vm2 = vcmp.ge.f32.partialorder %v349_v17, 0.0  ;;  %v354_v19 = vmul.f32 0.2, %v349_v17 }
 0x11c   : > { %v355_v21 = vsel %vm351_vm1, %v347_v15, %v353_v18 }
 0x11d   : > { %v363_v23 = vmul.f32 %v361_v20, %v355_v21  ;;  %v356_v24 = vsel %vm352_vm2, %v349_v17, %v354_v19 }
 0x11e   : > { %v364_v25 = vmul.f32 %v361_v20, %v356_v24 }
 0x11f   : > { %v366_v26 = vsel %vm365_vm3, %v363_v23, 0.0 }
 0x120   : > { %v367_v27 = vrot.slane %v366_v26, 4  ;;  %v373_v28 = vsel %vm365_vm3, %v364_v25, 0.0 }
 0x121   : > { %v374_v30 = vrot.slane %v373_v28, 4 }
 0x122   : > { %v368_v31 = vadd.f32 %v367_v27, %v366_v26 }
 0x123   : > { %v375_v32 = vadd.f32 %v374_v30, %v373_v28 }
 0x124   : > { %v369_v33 = vrot.slane %v368_v31, 2 }
 0x125   : > { %v376_v36 = vrot.slane %v375_v32, 2 }
 0x126   : > { %v370_v37 = vadd.f32 %v369_v33, %v368_v31 }
 0x127   : > { %v377_v38 = vadd.f32 %v376_v36, %v375_v32 }
 0x128   : > { %v371_v39 = vrot.slane %v370_v37, 1 }
 0x129   : > { %v378_v41 = vrot.slane %v377_v38, 1 }
 0x12a   : > { %v372_v42 = vadd.f32 %v371_v39, %v370_v37 }
 0x12b   : > { %v379_v43 = vadd.f32 %v378_v41, %v377_v38 }
 0x12c   : > { %v390_v44 = vadd.f32 %v389_v40, %v372_v42 }
 0x12d   : > { %v391_v45 = vadd.f32 %v389_v40, %v379_v43 }
 0x12e   : > { %v526_v46 = vmul.f32 -1.442695, %v390_v44 }
 0x12f   : > { %v527_v47 = vmul.f32 -1.442695, %v391_v45 }
 0x130   : > { %609 = vpow2.f32 %v526_v46 }
 0x131   : > { %611 = vpow2.f32 %v527_v47 }
 0x13a   : > { %v610_v48 = vpop.eup %609 }
 0x13b   : > { %v612_v49 = vpop.eup %611  ;;  %v398_v50 = vadd.f32 1.0, %v610_v48 }
 0x13c   : > { %v399_v51 = vadd.f32 1.0, %v612_v49 }
 0x13d   : > { %613 = vrcp.f32 %v398_v50 }
 0x13e   : > { %615 = vrcp.f32 %v399_v51 }
 0x147   : > { %v614_v52 = vpop.eup %613 }
 0x148   : > { %v616_v53 = vpop.eup %615  ;;  %v404_v54 = vmul.f32 %v614_v52, %v898_v5  ;;  %v406_v55 = vmul.f32 %v614_v52, %v902_v7 }
 0x149   : > { %v405_v56 = vmul.f32 %v616_v53, %v894_v3  ;;  %v407_v57 = vmul.f32 %v616_v53, %v896_v4 }
 0x14a   : > { %408 = vst [vmem:[%s262_s12] sm:$0xff] %v404_v54  ;;  %410 = vst [vmem:[%s262_s12 + $0x10] sm:$0xff] %v406_v55 }
 0x14b   : > { %409 = vst [vmem:[%s262_s12 + $0x8] sm:$0xff] %v405_v56  ;;  %411 = vst [vmem:[%s262_s12 + $0x18] sm:$0xff] %v407_v57 }
 0x14c   : > { %660 = shalt.err (!%p657_p5)
}
 0x14d   : > { %s661_s17 = scalar_lea.hbm %s923_s4, 512  ;;  %s665_s19 = scalar_lea.hbm %s981_s5, 1024 }
 0x14e   : > { %p662_p4 = scmp.ne.s32.totalorder %s923_s4, %s661_s17  ;;  %p666_p12 = scmp.lt.u32.totalorder %s923_s4, %s981_s5 }
 0x14f   : > { %p667_p1 = scmp.lt.u32.totalorder %s665_s19, %s661_s17  ;;  %p669_p8 = scmp.lt.u32.totalorder %s661_s17, %s923_s4 }
 0x150   : > { %p663_p7 = pnand %p662_p4, %p989_p9 }
 0x151   : > { %p668_p3 = por %p667_p1, %p666_p12 }
 0x152   : > { %p664_p10 = pneg %p663_p7 }
 0x153   : > { %p670_p11 = por %p669_p8, %p668_p3 }
 0x155   : > { %p671_p0 = pnand %p670_p11, %p664_p10 }
 0x157   : > { %674 = shalt.err (!%p671_p0)
}
 0x158   : > { %s737_s12 = smov 256   ;;  %s738_s14 = smov 16  }
 0x159   : > { %541 = dma.vmem_to_hbm [thread:$0]  (%p989_p9), %s925_s13, 512, %s923_s4, %s413_s23, %s737_s12, %s737_s12, %s738_s14  }
 0x15a PF: > { %s443_s16 = sand.u32 1, %s709_s20   ;;  %p990_p6 = scmp.ne.s32.totalorder %s986_s9, 0 }
 0x15b   : > { %p991_p13 = scmp.ge.s32.totalorder %s729_s25, 2  ;;  %s444_s28 = scalar_lea.sflag [#allocation5], %s443_s16 }
 0x15d   : > { %p548_p2 = pnand %p991_p13, %p990_p6 }
 0x15f   : > { %704 = dma.done.wait (!%p548_p2), %s444_s28, 512  }
 0x160   : > { %706 = vsyncadd (!%p548_p2), %s444_s28, 4294966784  ;;  %s23_s25 = sadd.s32 1, %s729_s25   ;;  %s992_s20 = smov %s713_s21 }
 0x161   : > { %p20_p5 = scmp.ge.s32.totalorder %s23_s25, 4   ;;  %s993_s21 = smov %s717_s22 }
 0x162   : > { %s994_s22 = smov %s828_s8  ;;  %s995_s23 = smov %s725_s24 }
 0x163   : > { %s996_s24 = smov %s998_s27  ;;  %22 = sbr.rel (!%p20_p5) target bundleno = 9 (0x9), region = 85 }
 0x16a   :  { %449 = vsyncpa [#allocation4], 1 }
 0x16b   :  { %451 = vsyncpa [#allocation4 + $0x1], 1 }
 0x16c   :  { %452 = vsyncpa [#allocation5], 1 }
 0x16d   :  { %454 = vsyncpa [#allocation5 + $0x1], 1 }

</bundles_post_ra>
